<compile_context>
chip_gen: v7x
topology: tpu7x:2x2x1
jax: 0.10.0
libtpu: 0.0.40
codegen_flags: <defaults>
</compile_context>

<pallas_src>
import functools

import jax
import jax.numpy as jnp
from jax.experimental import pallas as pl
from jax.experimental.pallas import tpu as pltpu


def _channel_gate_kernel(x_ref, w1_ref, b1_ref, w2_ref, b2_ref, out_ref, *,
                         hw_true, hw_pad):
    # x_ref/out_ref: (Bt, C, HWp);  w1: (C, Ch)  b1: (1, Ch)  w2: (Ch, C)  b2: (1, C)
    x = x_ref[...].astype(jnp.float32)

    # Spatial pooling.  If the lane axis was padded, mask the tail:
    # zeros for the sum, -inf for the max, and divide by the true H*W.
    if hw_true != hw_pad:
        col = jax.lax.broadcasted_iota(jnp.int32, x.shape, 2)
        valid = col < hw_true
        sum_x = jnp.sum(jnp.where(valid, x, 0.0), axis=-1)        # (Bt, C)
        max_x = jnp.max(jnp.where(valid, x, -jnp.inf), axis=-1)   # (Bt, C)
    else:
        sum_x = jnp.sum(x, axis=-1)
        max_x = jnp.max(x, axis=-1)
    avg_x = sum_x * (1.0 / float(hw_true))

    # Stack both pooled vectors and run the shared MLP once (halves MXU pushes
    # and the bias/ReLU VPU work in the per-step epilogue).
    pooled = jnp.concatenate([avg_x, max_x], axis=0)              # (2*Bt, C)
    h = jnp.dot(pooled, w1_ref[...], preferred_element_type=jnp.float32) + b1_ref[...]
    h = jnp.maximum(h, 0.0)
    att2 = jnp.dot(h, w2_ref[...], preferred_element_type=jnp.float32) + b2_ref[...]

    bt = avg_x.shape[0]
    scale = jax.nn.sigmoid(att2[:bt] + att2[bt:])                 # (Bt, C)

    # Re-read x for the broadcast multiply so the full (Bt, C, HWp) value is
    # not held live across the MLP (keeps vreg pressure low); the store is
    # lane-dense because HWp is a multiple of 128.
    out_ref[...] = (x_ref[...].astype(jnp.float32)
                    * scale[:, :, None]).astype(out_ref.dtype)


def channel_gate(x_nchw, w1, b1, w2, b2, *, block_bytes_budget=8 * 1024 * 1024):
    """CBAM ChannelGate forward. x_nchw: (B, C, H, W). Returns (B, C, H, W)."""
    B, C, H, W = x_nchw.shape
    hw_true = H * W
    hw_pad = ((hw_true + 127) // 128) * 128            # lane-dense last dim
    itemsize = jnp.dtype(x_nchw.dtype).itemsize

    x_flat = x_nchw.reshape(B, C, hw_true)
    if hw_pad != hw_true:
        x_flat = jnp.pad(x_flat, ((0, 0), (0, 0), (0, hw_pad - hw_true)))

    # Largest batch tile that divides B and keeps one block within the budget
    # (sized so 2x input + 2x output double buffers still fit v7x's 64 MiB VMEM).
    b_tile = 1
    for cand in range(1, B + 1):
        if B % cand == 0 and cand * C * hw_pad * itemsize <= block_bytes_budget:
            b_tile = cand
    grid = (B // b_tile,)
    # TODO(synk): for feature maps where even a (1, C, HW) block exceeds the
    # budget, switch to a two-phase (pool over HW, then scale) structure.

    block_bytes = b_tile * C * hw_pad * itemsize
    param_bytes = sum(int(a.size) * jnp.dtype(a.dtype).itemsize
                      for a in (w1, b1, w2, b2))
    vmem_limit = int(min(100 * 2**20,
                         max(32 * 2**20,
                             4 * block_bytes + 2 * param_bytes + 4 * 2**20)))

    data_spec = pl.BlockSpec((b_tile, C, hw_pad), lambda b: (b, 0, 0))

    def param_spec(a):
        return pl.BlockSpec(a.shape, lambda b: (0, 0))   # resident across grid

    kernel = functools.partial(_channel_gate_kernel, hw_true=hw_true, hw_pad=hw_pad)

    out_flat = pl.pallas_call(
        kernel,
        out_shape=jax.ShapeDtypeStruct((B, C, hw_pad), x_nchw.dtype),
        grid=grid,
        in_specs=[data_spec, param_spec(w1), param_spec(b1),
                  param_spec(w2), param_spec(b2)],
        out_specs=data_spec,
        compiler_params=pltpu.CompilerParams(
            dimension_semantics=("parallel",),
            vmem_limit_bytes=vmem_limit,
        ),
    )(x_flat, w1, b1, w2, b2)

    if hw_pad != hw_true:
        out_flat = out_flat[:, :, :hw_true]
    return out_flat.reshape(B, C, H, W)


def reference_channel_gate(x, w1, b1, w2, b2):
    avg_pool = jnp.mean(x, axis=(2, 3))
    max_pool = jnp.max(x, axis=(2, 3))

    def mlp(p):
        h = jnp.maximum(p @ w1 + b1, 0.0)
        return h @ w2 + b2

    att = mlp(avg_pool) + mlp(max_pool)
    scale = jax.nn.sigmoid(att)
    return x * scale[:, :, None, None]


if __name__ == "__main__":
    # gate_channels=32, reduction_ratio=16 (module defaults) -> hidden = 2
    C = 32
    reduction_ratio = 16
    Ch = C // reduction_ratio

    key = jax.random.PRNGKey(0)
    k1, k2, k3, k4, kx1, kx2 = jax.random.split(key, 6)

    lim1 = 1.0 / float(C) ** 0.5
    lim2 = 1.0 / float(Ch) ** 0.5
    w1 = jax.random.uniform(k1, (C, Ch), minval=-lim1, maxval=lim1, dtype=jnp.float32)
    b1 = jax.random.uniform(k2, (1, Ch), minval=-lim1, maxval=lim1, dtype=jnp.float32)
    w2 = jax.random.uniform(k3, (Ch, C), minval=-lim2, maxval=lim2, dtype=jnp.float32)
    b2 = jax.random.uniform(k4, (1, C), minval=-lim2, maxval=lim2, dtype=jnp.float32)

    # Test 1: lane-dense spatial (HW = 256), single grid step.
    x1 = jax.random.normal(kx1, (2, C, 16, 16), dtype=jnp.float32)
    out1 = jax.block_until_ready(channel_gate(x1, w1, b1, w2, b2))
    ref1 = reference_channel_gate(x1, w1, b1, w2, b2)
    assert out1.shape == x1.shape
    assert jnp.allclose(out1, ref1, atol=1e-5, rtol=1e-5)

    # Test 2: HW = 64 (padded to 128) + tiny block budget -> b_tile = 1, a
    # 4-step pipelined batch grid, exercising the masked pooling path.
    x2 = jax.random.normal(kx2, (4, C, 8, 8), dtype=jnp.float32)
    out2 = jax.block_until_ready(
        channel_gate(x2, w1, b1, w2, b2, block_bytes_budget=C * 128 * 4))
    ref2 = reference_channel_gate(x2, w1, b1, w2, b2)
    assert out2.shape == x2.shape
    assert jnp.allclose(out2, ref2, atol=1e-5, rtol=1e-5)

    print("KERNEL_OK")
</pallas_src>

<mosaic_0001>
module attributes {stable_mosaic.version = 11 : i64} {
  func.func @_channel_gate_kernel(%arg0: i32, %arg1: memref<2x32x256xf32, #tpu.memory_space<vmem>>, %arg2: memref<32x2xf32, #tpu.memory_space<vmem>>, %arg3: memref<1x2xf32, #tpu.memory_space<vmem>>, %arg4: memref<2x32xf32, #tpu.memory_space<vmem>>, %arg5: memref<1x32xf32, #tpu.memory_space<vmem>>, %arg6: memref<2x32x256xf32, #tpu.memory_space<vmem>>) attributes {dimension_semantics = [#tpu.dimension_semantics<parallel>], iteration_bounds = array<i64: 1>, scalar_prefetch = 0 : i64, scratch_operands = 0 : i64, tpu.core_type = #tpu.core_type<tc>, window_params = [{transform_indices = @transform_0, window_bounds = array<i64: 2, 32, 256>}, {pipeline_mode = #tpu.pipeline_mode<synchronous>, transform_indices = @transform_1, window_bounds = array<i64: 32, 2>}, {pipeline_mode = #tpu.pipeline_mode<synchronous>, transform_indices = @transform_2, window_bounds = array<i64: 1, 2>}, {pipeline_mode = #tpu.pipeline_mode<synchronous>, transform_indices = @transform_3, window_bounds = array<i64: 2, 32>}, {pipeline_mode = #tpu.pipeline_mode<synchronous>, transform_indices = @transform_4, window_bounds = array<i64: 1, 32>}, {transform_indices = @transform_5, window_bounds = array<i64: 2, 32, 256>}]} {
    %c0 = arith.constant 0 : index
    %c0_0 = arith.constant 0 : index
    %c0_1 = arith.constant 0 : index
    %0 = vector.load %arg1[%c0, %c0_0, %c0_1] : memref<2x32x256xf32, #tpu.memory_space<vmem>>, vector<2x32x256xf32>
    %cst = arith.constant dense<0.000000e+00> : vector<2x32xf32>
    %1 = vector.multi_reduction <add>, %0, %cst [2] : vector<2x32x256xf32> to vector<2x32xf32>
    %cst_2 = arith.constant dense<0xFF800000> : vector<2x32xf32>
    %2 = vector.multi_reduction <maximumf>, %0, %cst_2 [2] : vector<2x32x256xf32> to vector<2x32xf32>
    %cst_3 = arith.constant 3.906250e-03 : f32
    %3 = vector.broadcast %cst_3 : f32 to vector<2x32xf32>
    %4 = arith.mulf %1, %3 : vector<2x32xf32>
    %5 = tpu.concatenate %4, %2 in 0 : vector<2x32xf32>, vector<2x32xf32> -> vector<4x32xf32>
    %c0_4 = arith.constant 0 : index
    %c0_5 = arith.constant 0 : index
    %6 = vector.load %arg2[%c0_4, %c0_5] : memref<32x2xf32, #tpu.memory_space<vmem>>, vector<32x2xf32>
    %cst_6 = arith.constant dense<0.000000e+00> : vector<4x2xf32>
    %7 = tpu.matmul %5, %6, %cst_6 {dimension_numbers = #tpu.dot_dimension_numbers<[1], [0], [0], [1], [0, 0, 1, 1], [], []>} : vector<4x32xf32>, vector<32x2xf32>, vector<4x2xf32> -> vector<4x2xf32>
    %c0_7 = arith.constant 0 : index
    %c0_8 = arith.constant 0 : index
    %8 = vector.load %arg3[%c0_7, %c0_8] : memref<1x2xf32, #tpu.memory_space<vmem>>, vector<1x2xf32>
    %9 = vector.broadcast %8 : vector<1x2xf32> to vector<4x2xf32>
    %10 = arith.addf %7, %9 : vector<4x2xf32>
    %cst_9 = arith.constant 0.000000e+00 : f32
    %11 = vector.broadcast %cst_9 : f32 to vector<4x2xf32>
    %12 = arith.maximumf %10, %11 : vector<4x2xf32>
    %c0_10 = arith.constant 0 : index
    %c0_11 = arith.constant 0 : index
    %13 = vector.load %arg4[%c0_10, %c0_11] : memref<2x32xf32, #tpu.memory_space<vmem>>, vector<2x32xf32>
    %cst_12 = arith.constant dense<0.000000e+00> : vector<4x32xf32>
    %14 = tpu.matmul %12, %13, %cst_12 {dimension_numbers = #tpu.dot_dimension_numbers<[1], [0], [0], [1], [0, 0, 1, 1], [], []>} : vector<4x2xf32>, vector<2x32xf32>, vector<4x32xf32> -> vector<4x32xf32>
    %c0_13 = arith.constant 0 : index
    %c0_14 = arith.constant 0 : index
    %15 = vector.load %arg5[%c0_13, %c0_14] : memref<1x32xf32, #tpu.memory_space<vmem>>, vector<1x32xf32>
    %16 = vector.broadcast %15 : vector<1x32xf32> to vector<4x32xf32>
    %17 = arith.addf %14, %16 : vector<4x32xf32>
    %18 = vector.extract_strided_slice %17 {offsets = [0, 0], sizes = [2, 32], strides = [1, 1]} : vector<4x32xf32> to vector<2x32xf32>
    %19 = vector.extract_strided_slice %17 {offsets = [2, 0], sizes = [2, 32], strides = [1, 1]} : vector<4x32xf32> to vector<2x32xf32>
    %20 = arith.addf %18, %19 : vector<2x32xf32>
    %21 = arith.negf %20 : vector<2x32xf32>
    %22 = math.exp %21 : vector<2x32xf32>
    %cst_15 = arith.constant 1.000000e+00 : f32
    %23 = vector.broadcast %cst_15 : f32 to vector<2x32xf32>
    %24 = arith.addf %23, %22 : vector<2x32xf32>
    %25 = arith.divf %23, %24 : vector<2x32xf32>
    %c0_16 = arith.constant 0 : index
    %c0_17 = arith.constant 0 : index
    %c0_18 = arith.constant 0 : index
    %26 = vector.load %arg1[%c0_16, %c0_17, %c0_18] : memref<2x32x256xf32, #tpu.memory_space<vmem>>, vector<2x32x256xf32>
    %27 = vector.shape_cast %25 : vector<2x32xf32> to vector<2x32x1xf32>
    %28 = vector.broadcast %27 : vector<2x32x1xf32> to vector<2x32x256xf32>
    %29 = arith.mulf %26, %28 : vector<2x32x256xf32>
    %c0_19 = arith.constant 0 : index
    %c0_20 = arith.constant 0 : index
    %c0_21 = arith.constant 0 : index
    %30 = vector.load %arg6[%c0_19, %c0_20, %c0_21] : memref<2x32x256xf32, #tpu.memory_space<vmem>>, vector<2x32x256xf32>
    tpu.vector_store %arg6[%c0_19, %c0_20, %c0_21], %29 {strides = array<i32>} : memref<2x32x256xf32, #tpu.memory_space<vmem>>, vector<2x32x256xf32>,
    return
  }
  func.func @transform_0(%arg0: i32) -> (i32, i32, i32) {
    %c0_i32 = arith.constant 0 : i32
    %c0_i32_0 = arith.constant 0 : i32
    %c0_i32_1 = arith.constant 0 : i32
    return %arg0, %c0_i32, %c0_i32_0 : i32, i32, i32
  }
  func.func @transform_1(%arg0: i32) -> (i32, i32) {
    %c0_i32 = arith.constant 0 : i32
    %c0_i32_0 = arith.constant 0 : i32
    %c0_i32_1 = arith.constant 0 : i32
    return %c0_i32, %c0_i32_0 : i32, i32
  }
  func.func @transform_2(%arg0: i32) -> (i32, i32) {
    %c0_i32 = arith.constant 0 : i32
    %c0_i32_0 = arith.constant 0 : i32
    %c0_i32_1 = arith.constant 0 : i32
    return %c0_i32, %c0_i32_0 : i32, i32
  }
  func.func @transform_3(%arg0: i32) -> (i32, i32) {
    %c0_i32 = arith.constant 0 : i32
    %c0_i32_0 = arith.constant 0 : i32
    %c0_i32_1 = arith.constant 0 : i32
    return %c0_i32, %c0_i32_0 : i32, i32
  }
  func.func @transform_4(%arg0: i32) -> (i32, i32) {
    %c0_i32 = arith.constant 0 : i32
    %c0_i32_0 = arith.constant 0 : i32
    %c0_i32_1 = arith.constant 0 : i32
    return %c0_i32, %c0_i32_0 : i32, i32
  }
  func.func @transform_5(%arg0: i32) -> (i32, i32, i32) {
    %c0_i32 = arith.constant 0 : i32
    %c0_i32_0 = arith.constant 0 : i32
    %c0_i32_1 = arith.constant 0 : i32
    return %arg0, %c0_i32, %c0_i32_0 : i32, i32, i32
  }
}

</mosaic_0001>

<bundles_post_ra>
// kernel: tpu_custom_call.1
= control target key start
LH: loop header
LB: loop body
LE: loop exit
PB: predicated region body
PF: predicated region fallthrough
CT: control target
= control target key end

     0   :  { %10 = vsyncpa [#allocation3], 0  ;;  %s767_s0 = inlined_call_operand.hbm [shape: f32[2,32,256], index: 0, kind: input, shape index: {}]   ;;  %s768_s1 = inlined_call_operand.vmem [shape: f32[32,2], index: 1, kind: input, shape index: {}]   ;;  %s769_s2 = inlined_call_operand.vmem [shape: f32[1,2], index: 2, kind: input, shape index: {}]   ;;  %s770_s3 = inlined_call_operand.vmem [shape: f32[2,32], index: 3, kind: input, shape index: {}]   ;;  %s771_s4 = inlined_call_operand.vmem [shape: f32[1,32], index: 4, kind: input, shape index: {}]   ;;  %s772_s5 = inlined_call_operand.hbm [shape: f32[2,32,256], index: 5, kind: output, shape index: {}]  }
   0x1   :  { %11 = vsyncpa [#allocation4], 0  ;;  %s577_s18 = smov [#allocation2]   ;;  %s529_s22 = scalar_lea.hbm %s767_s0, 2048 }
   0x2   :  { %s17_s19 = sshll.u32 %s577_s18, 4  ;;  %p530_p0 = scmp.ne.s32.totalorder %s767_s0, %s529_s22  ;;  %s18_s19 = int_to_ptr.vmem [resolvable:$true] %s17_s19 }
   0x3   :  { %p533_p1 = scmp.lt.u32.totalorder %s529_s22, %s767_s0 }
   0x5   :  { %p535_p2 = pnand %p533_p1, %p530_p0 }
   0x7   :  { %538 = shalt.err (!%p535_p2)
}
   0x8   :  { %s539_s27 = scalar_lea.vmem %s18_s19, 2048  ;;  %p544_p4 = scmp.lt.s32.totalorder %s18_s19, %s18_s19 }
   0x9   :  { %p540_p3 = scmp.ne.s32.totalorder %s18_s19, %s539_s27  ;;  %p545_p5 = scmp.lt.s32.totalorder %s539_s27, %s539_s27 }
   0xb   :  { %p546_p6 = por %p545_p5, %p544_p4 }
   0xd   :  { %p547_p7 = pnand %p546_p6, %p540_p3 }
   0xf   :  { %550 = shalt.err (!%p547_p7)
}
  0x10   :  { %s578_s28 = smov 256   ;;  %s579_s29 = smov 16  }
  0x11   :  { %23 = dma.hbm_to_vmem [thread:$0]  %s767_s0, 2048, %s18_s19, [#allocation3], %s578_s28, %s578_s28, %s579_s29  }
  0x12   :  { %573 = dma.done.wait [#allocation3], 2048  }
  0x13   :  { %574 = vsyncadd [#allocation3], 4294965248  ;;  %v629_v0 = vld [vmem:[#allocation2 + $0x40] sm:$0xff]  ;;  %v631_v1 = vld [vmem:[#allocation2 + $0x48] sm:$0xff]  ;;  %v580_v35 = vmov 0.0|0.0   ;;  %vm581_vm0 = vmmov 0   ;;  %v115_v45 = vlaneseq }
  0x14   :  { %v633_v2 = vld [vmem:[#allocation2] sm:$0xff]  ;;  %v63_v3 = vadd.f32 %v631_v1, %v629_v0  ;;  %v637_v4 = vld [vmem:[#allocation2 + $0x8] sm:$0xff]  ;;  %v639_v5 = vld [vmem:[#allocation2 + $0x50] sm:$0xff]  ;;  %v87_v27 = vmax.f32 %v629_v0, %v631_v1  ;;  %512 = vmatprep.subr.bf16.mxu0 %v580_v35  ;;  %v582_v39 = vmov 0.0   ;;  %vm126_vm1 = vcmask 130112  }
  0x15   :  { %v641_v6 = vld [vmem:[#allocation2 + $0x58] sm:$0xff]  ;;  %v51_v7 = vadd.f32 %v637_v4, %v633_v2  ;;  %v645_v8 = vld [vmem:[#allocation2 + $0x10] sm:$0xff]  ;;  %v653_v12 = vld [vmem:[#allocation2 + $0x60] sm:$0xff]  ;;  %v75_v25 = vmax.f32 %v633_v2, %v637_v4  ;;  %504 = vmatprep.mubr.msk.f32.mxu0 %vm581_vm0, %v582_v39  ;;  %507 = vmatprep.subr.mxu1 %v582_v39  ;;  %v116_v48 = vand.u32 127, %v115_v45  ;;  %v705_v50 = vshrl.u32 %v115_v45, 7 }
  0x16   :  { %v647_v9 = vld [vmem:[#allocation2 + $0x18] sm:$0xff]  ;;  %64 = vadd.xlane.f32.xlu1 %v63_v3  ;;  %v66_v10 = vadd.f32 %v641_v6, %v639_v5  ;;  %v655_v13 = vld [vmem:[#allocation2 + $0x68] sm:$0xff]  ;;  %v657_v14 = vld [vmem:[#allocation2 + $0x20] sm:$0xff]  ;;  %v90_v26 = vmax.f32 %v639_v5, %v641_v6  ;;  %509 = vmatprep.mubr.msk.f32.mxu1 %vm581_vm0, %v582_v39  ;;  %vm133_vm2 = vcmask 195712   ;;  %vm140_vm3 = vcmask 261312  }
  0x17   :  { %52 = vadd.xlane.f32.xlu0 %v51_v7  ;;  %v54_v11 = vadd.f32 %v647_v9, %v645_v8  ;;  %v659_v15 = vld [vmem:[#allocation2 + $0x28] sm:$0xff]  ;;  %v69_v16 = vadd.f32 %v655_v13, %v653_v12  ;;  %v665_v18 = vld [vmem:[#allocation2 + $0x70] sm:$0xff]  ;;  %v667_v19 = vld [vmem:[#allocation2 + $0x78] sm:$0xff]  ;;  %v78_v24 = vmax.f32 %v645_v8, %v647_v9  ;;  %v93_v28 = vmax.f32 %v653_v12, %v655_v13 }
  0x18   :  { %v57_v17 = vadd.f32 %v659_v15, %v657_v14  ;;  %v669_v20 = vld [vmem:[#allocation2 + $0x30] sm:$0xff]  ;;  %v671_v21 = vld [vmem:[#allocation2 + $0x38] sm:$0xff]  ;;  %v72_v22 = vadd.f32 %v667_v19, %v665_v18  ;;  %v81_v29 = vmax.f32 %v657_v14, %v659_v15  ;;  %v96_v30 = vmax.f32 %v665_v18, %v667_v19  ;;  %v215_v32 = vld [vmem:[%s768_s1] sm:$0xff] }
  0x19   :  { %v60_v23 = vadd.f32 %v671_v21, %v669_v20  ;;  %v84_v31 = vmax.f32 %v669_v20, %v671_v21  ;;  %v216_v33 = vld [vmem:[%s768_s1 + $0x8] sm:$0xff]  ;;  %v217_v36 = vld [vmem:[%s768_s1 + $0x10] sm:$0xff]  ;;  %v218_v37 = vld [vmem:[%s768_s1 + $0x18] sm:$0xff]  ;;  %v121_v51 = vadd.s32 4294967288, %v116_v48  ;;  %v128_v52 = vadd.s32 4294967280, %v116_v48 }
  0x1a   :  { %67 = vadd.xlane.f32.xlu1 %v66_v10  ;;  %v513_v34 = vpack.c.bf16 %v216_v33, %v215_v32  ;;  %v516_v38 = vpack.c.bf16 %v218_v37, %v217_v36  ;;  %v135_v54 = vadd.s32 4294967272, %v116_v48  ;;  %v119_v56 = vsub.s32 %v116_v48, %v705_v50 }
  0x1b   :  { %55 = vadd.xlane.f32.xlu0 %v54_v11  ;;  %v124_v57 = vsub.s32 %v121_v51, %v705_v50  ;;  %v131_v59 = vsub.s32 %v128_v52, %v705_v50  ;;  %vm161_vm4 = vcmask 1041409   ;;  %vm210_vm5 = vcmask 1043459  }
  0x1c   :  { %514 = vmatpush3.bf16.msra.mxu0 %v513_v34  ;;  %v138_v10 = vsub.s32 %v135_v54, %v705_v50  ;;  %vm213_vm6 = vcmask 1041408   ;;  %vm226_vm7 = vcmask 261120   ;;  %vm309_vm8 = vcmask 15360  }
  0x1d   :  { %515 = vmatprep.subr.bf16.mxu0 %v580_v35 }
  0x1e   :  { %70 = vadd.xlane.f32.xlu1 %v69_v16 }
  0x1f   :  { %58 = vadd.xlane.f32.xlu0 %v57_v17 }
  0x20   :  { %517 = vmatpush3.bf16.msra.mxu0 %v516_v38 }
  0x22   :  { %73 = vadd.xlane.f32.xlu1 %v72_v22 }
  0x23   :  { %61 = vadd.xlane.f32.xlu0 %v60_v23 }
  0x26   :  { %79 = vmax.xlane.f32.xlu1 %v78_v24 }
  0x27   :  { %76 = vmax.xlane.f32.xlu0 %v75_v25 }
  0x2a   :  { %91 = vmax.xlane.f32.xlu1 %v90_v26 }
  0x2b   :  { %88 = vmax.xlane.f32.xlu0 %v87_v27 }
  0x2e   :  { %94 = vmax.xlane.f32.xlu1 %v93_v28 }
  0x2f   :  { %82 = vmax.xlane.f32.xlu0 %v81_v29 }
  0x32   :  { %97 = vmax.xlane.f32.xlu1 %v96_v30 }
  0x33   :  { %85 = vmax.xlane.f32.xlu0 %v84_v31 }
  0xa3   :  { %v65_v40 = vpop.xlane.xlu1 %64 }
  0xa4   :  { %v53_v41 = vpop.xlane.xlu0 %52  ;;  %v103_v60 = vmul.f32 0.00390625, %v65_v40 }
  0xa5   :  { %v99_v61 = vmul.f32 0.00390625, %v53_v41 }
  0xa6   :  { %v145_v23 = vrot.slane %v103_v60, %v119_v56 }
  0xa7   :  { %v68_v42 = vpop.xlane.xlu1 %67  ;;  %v120_v24 = vrot.slane %v99_v61, %v119_v56 }
  0xa8   :  { %v56_v43 = vpop.xlane.xlu0 %55  ;;  %v104_v58 = vmul.f32 0.00390625, %v68_v42 }
  0xa9   :  { %v100_v62 = vmul.f32 0.00390625, %v56_v43 }
  0xaa   :  { %v149_v22 = vrot.slane %v104_v58, %v124_v57  ;;  %v301_v58 = vld [vmem:[%s770_s3] sm:$0x3] }
  0xab   :  { %v71_v44 = vpop.xlane.xlu1 %70  ;;  %v125_v25 = vrot.slane %v100_v62, %v124_v57  ;;  %508 = vmatpush3.msk.msra.mxu1 %vm213_vm6, %v301_v58 }
  0xac   :  { %v59_v46 = vpop.xlane.xlu0 %58  ;;  %v105_v63 = vmul.f32 0.00390625, %v71_v44  ;;  %v150_v37 = vsel %vm126_vm1, %v149_v22, %v145_v23 }
  0xad   :  { %v101_v7 = vmul.f32 0.00390625, %v59_v46  ;;  %v127_v39 = vsel %vm126_vm1, %v125_v25, %v120_v24  ;;  %v398_v25 = vsub.s32 0, %v705_v50 }
  0xae   :  { %v154_v26 = vrot.slane %v105_v63, %v131_v59 }
  0xaf   :  { %v74_v47 = vpop.xlane.xlu1 %73  ;;  %v132_v28 = vrot.slane %v101_v7, %v131_v59 }
  0xb0   :  { %v62_v49 = vpop.xlane.xlu0 %61  ;;  %v106_v11 = vmul.f32 0.00390625, %v74_v47  ;;  %v155_v40 = vsel %vm133_vm2, %v154_v26, %v150_v37 }
  0xb1   :  { %v102_v17 = vmul.f32 0.00390625, %v62_v49  ;;  %v134_v42 = vsel %vm133_vm2, %v132_v28, %v127_v39  ;;  %v417_v28 = vsub.s32 1, %v705_v50 }
  0xb2   :  { %v159_v29 = vrot.slane %v106_v11, %v138_v10 }
  0xb3   :  { %v80_v53 = vpop.xlane.xlu1 %79  ;;  %v139_v33 = vrot.slane %v102_v17, %v138_v10 }
  0xb4   :  { %v77_v55 = vpop.xlane.xlu0 %76  ;;  %v179_v34 = vrot.slane %v80_v53, %v124_v57  ;;  %v160_v43 = vsel %vm140_vm3, %v159_v29, %v155_v40 }
  0xb5   :  { %v175_v35 = vrot.slane %v77_v55, %v119_v56  ;;  %v141_v47 = vsel %vm140_vm3, %v139_v33, %v134_v42 }
  0xb6   :  { %v162_v55 = vsel %vm161_vm4, %v160_v43, %v141_v47 }
  0xb7   :  { %v92_v3 = vpop.xlane.xlu1 %91  ;;  %v180_v48 = vsel %vm126_vm1, %v179_v34, %v175_v35 }
  0xb8   :  { %v89_v16 = vpop.xlane.xlu0 %88  ;;  %v198_v30 = vrot.slane %v92_v3, %v124_v57  ;;  %v485_v3 = vld [vmem:[%s771_s4] ss:$0 sm:$0xff] }
  0xb9   :  { %v194_v31 = vrot.slane %v89_v16, %v119_v56 }
  0xbb   :  { %v95_v27 = vpop.xlane.xlu1 %94  ;;  %v199_v44 = vsel %vm126_vm1, %v198_v30, %v194_v31 }
  0xbc   :  { %v83_v32 = vpop.xlane.xlu0 %82  ;;  %v203_v36 = vrot.slane %v95_v27, %v131_v59 }
  0xbd   :  { %v184_v38 = vrot.slane %v83_v32, %v131_v59  ;;  %v483_v59 = vld [vmem:[%s769_s2] ss:$0 sm:$0xff]  ;;  %s583_s2 = smov [#allocation5]  }
  0xbe   :  { %v204_v49 = vsel %vm133_vm2, %v203_v36, %v199_v44  ;;  %s471_s3 = sshll.u32 %s583_s2, 4  ;;  %s472_s3 = int_to_ptr.vmem [resolvable:$true] %s471_s3 }
  0xbf   :  { %v98_v41 = vpop.xlane.xlu1 %97  ;;  %v185_v52 = vsel %vm133_vm2, %v184_v38, %v180_v48  ;;  %s551_s4 = scalar_lea.vmem %s472_s3, 2048  ;;  %p556_p9 = scmp.lt.s32.totalorder %s472_s3, %s472_s3 }
  0xc0   :  { %v208_v45 = vrot.slane %v98_v41, %v138_v10  ;;  %v86_v46 = vpop.xlane.xlu0 %85  ;;  %p552_p8 = scmp.ne.s32.totalorder %s472_s3, %s551_s4  ;;  %p557_p10 = scmp.lt.s32.totalorder %s551_s4, %s551_s4 }
  0xc1   :  { %v189_v51 = vrot.slane %v86_v46, %v138_v10 }
  0xc2   :  { %v209_v53 = vsel %vm140_vm3, %v208_v45, %v204_v49  ;;  %p558_p11 = por %p557_p10, %p556_p9 }
  0xc3   :  { %v190_v54 = vsel %vm140_vm3, %v189_v51, %v185_v52 }
  0xc4   :  { %v211_v56 = vsel %vm210_vm5, %v209_v53, %v190_v54  ;;  %p559_p12 = pnand %p558_p11, %p552_p8 }
  0xc5   :  { %v214_v57 = vsel %vm213_vm6, %v162_v55, %v211_v56 }
  0xc6   :  { %505 = vmatmul.mubr.msk.f32.vlgmr.msra.gmra.mrb[0].mxu0 %vm226_vm7, %v214_v57 }
 0x199   :  { %v296_v60 = vpop.f32.mrb[0].mxu0 }
 0x19a   :  { %v297_v61 = vadd.f32 %v483_v59, %v296_v60  ;;  %v506_v62 = vpop.f32.mrb[1].mxu0 }
 0x19c   :  { %v300_v63 = vmax.f32 %v297_v61, 0.0 }
 0x19e   :  { %510 = vmatmul.mubr.msk.f32.vlgmr.msra.gmra.mrb[0].mxu1 %vm309_vm8, %v300_v63 }
 0x271   :  { %v382_v7 = vpop.f32.mrb[0].mxu1 }
 0x272   :  { %v383_v10 = vadd.f32 %v485_v3, %v382_v7  ;;  %v511_v11 = vpop.f32.mrb[1].mxu1 }
 0x274   :  { %v387_v16 = vrot.slane %v383_v10, 2 }
 0x276   :  { %v389_v17 = vadd.f32 %v387_v16, %v383_v10 }
 0x278   :  { %v488_v22 = vmul.f32 -1.442695, %v389_v17 }
 0x27a   :  { %525 = vpow2.f32 %v488_v22 }
 0x284   :  { %v526_v23 = vpop.eup %525 }
 0x285   :  { %v393_v24 = vadd.f32 1.0, %v526_v23 }
 0x287   :  { %527 = vrcp.f32 %v393_v24 }
 0x291   :  { %v528_v26 = vpop.eup %527 }
 0x292   :  { %v399_v27 = vrot.slane %v528_v26, %v398_v25  ;;  %v418_v29 = vrot.slane %v528_v26, %v417_v28 }
 0x294   :  { %405 = vbcast.lane.b32.xlu1 %v399_v27, 264  ;;  %401 = vbcast.lane.b32.xlu0 %v399_v27, 256 }
 0x298   :  { %409 = vbcast.lane.b32.xlu1 %v399_v27, 272  ;;  %420 = vbcast.lane.b32.xlu0 %v418_v29, 256 }
 0x29c   :  { %413 = vbcast.lane.b32.xlu1 %v399_v27, 280  ;;  %428 = vbcast.lane.b32.xlu0 %v418_v29, 272 }
 0x2a0   :  { %424 = vbcast.lane.b32.xlu1 %v418_v29, 264 }
 0x2a4   :  { %432 = vbcast.lane.b32.xlu1 %v418_v29, 280 }
 0x306   :  { %v406_v30 = vpop.permute.xlu1 %405  ;;  %v402_v31 = vpop.permute.xlu0 %401 }
 0x307   :  { %v436_v32 = vmul.f32 %v406_v30, %v645_v8  ;;  %v437_v33 = vmul.f32 %v406_v30, %v647_v9  ;;  %v434_v34 = vmul.f32 %v402_v31, %v633_v2  ;;  %v435_v35 = vmul.f32 %v402_v31, %v637_v4 }
 0x309   :  { %452 = vst [vmem:[#allocation5 + $0x10] sm:$0xff] %v436_v32  ;;  %453 = vst [vmem:[#allocation5 + $0x18] sm:$0xff] %v437_v33 }
 0x30a   :  { %450 = vst [vmem:[#allocation5] sm:$0xff] %v434_v34  ;;  %451 = vst [vmem:[#allocation5 + $0x8] sm:$0xff] %v435_v35  ;;  %v410_v50 = vpop.permute.xlu1 %409  ;;  %v421_v36 = vpop.permute.xlu0 %420 }
 0x30b   :  { %v438_v37 = vmul.f32 %v410_v50, %v657_v14  ;;  %v439_v38 = vmul.f32 %v410_v50, %v659_v15  ;;  %v442_v39 = vmul.f32 %v421_v36, %v629_v0  ;;  %v443_v8 = vmul.f32 %v421_v36, %v631_v1 }
 0x30d   :  { %454 = vst [vmem:[#allocation5 + $0x20] sm:$0xff] %v438_v37  ;;  %455 = vst [vmem:[#allocation5 + $0x28] sm:$0xff] %v439_v38 }
 0x30e   :  { %458 = vst [vmem:[#allocation5 + $0x40] sm:$0xff] %v442_v39  ;;  %459 = vst [vmem:[#allocation5 + $0x48] sm:$0xff] %v443_v8  ;;  %v414_v2 = vpop.permute.xlu1 %413  ;;  %v429_v4 = vpop.permute.xlu0 %428 }
 0x30f   :  { %v440_v9 = vmul.f32 %v414_v2, %v669_v20  ;;  %v441_v40 = vmul.f32 %v414_v2, %v671_v21  ;;  %v446_v41 = vmul.f32 %v429_v4, %v653_v12  ;;  %v447_v14 = vmul.f32 %v429_v4, %v655_v13 }
 0x311   :  { %456 = vst [vmem:[#allocation5 + $0x30] sm:$0xff] %v440_v9  ;;  %457 = vst [vmem:[#allocation5 + $0x38] sm:$0xff] %v441_v40 }
 0x312   :  { %462 = vst [vmem:[#allocation5 + $0x60] sm:$0xff] %v446_v41  ;;  %463 = vst [vmem:[#allocation5 + $0x68] sm:$0xff] %v447_v14  ;;  %v425_v0 = vpop.permute.xlu1 %424 }
 0x313   :  { %v444_v1 = vmul.f32 %v425_v0, %v639_v5  ;;  %v445_v15 = vmul.f32 %v425_v0, %v641_v6 }
 0x315   :  { %460 = vst [vmem:[#allocation5 + $0x50] sm:$0xff] %v444_v1  ;;  %461 = vst [vmem:[#allocation5 + $0x58] sm:$0xff] %v445_v15 }
 0x316   :  { %v433_v20 = vpop.permute.xlu1 %432 }
 0x317   :  { %v448_v21 = vmul.f32 %v433_v20, %v665_v18  ;;  %v449_v12 = vmul.f32 %v433_v20, %v667_v19 }
 0x319   :  { %464 = vst [vmem:[#allocation5 + $0x70] sm:$0xff] %v448_v21  ;;  %465 = vst [vmem:[#allocation5 + $0x78] sm:$0xff] %v449_v12 }
 0x31a   :  { %562 = shalt.err (!%p559_p12)
}
 0x31b   :  { %s563_s21 = scalar_lea.hbm %s772_s5, 2048 }
 0x31c   :  { %p564_p13 = scmp.ne.s32.totalorder %s772_s5, %s563_s21  ;;  %p567_p0 = scmp.lt.u32.totalorder %s563_s21, %s772_s5 }
 0x31e   :  { %p569_p1 = pnand %p567_p0, %p564_p13 }
 0x320   :  { %572 = shalt.err (!%p569_p1)
}
 0x321   :  { %477 = dma.vmem_to_hbm [thread:$0]  %s472_s3, 2048, %s772_s5, [#allocation4], %s578_s28, %s578_s28, %s579_s29  }
 0x322   :  { %575 = dma.done.wait [#allocation4], 2048  }
 0x323   :  { %576 = vsyncadd [#allocation4], 4294965248 }
 0x324   :  { %481 = vsyncpa [#allocation3], 1 }
 0x325   :  { %482 = vsyncpa [#allocation4], 1 }

</bundles_post_ra>
